<compile_context>
chip_gen: v6e
topology: v6e:2x2x1
jax: 0.10.0
libtpu: 0.0.40
codegen_flags: <defaults>
</compile_context>

<pallas_src>
import functools

import numpy as np
import jax
import jax.numpy as jnp
from jax.experimental import pallas as pl
from jax.experimental.pallas import tpu as pltpu


# ----------------------------------------------------------------------------
# Config (stands in for the PyTorch `config` object)
# ----------------------------------------------------------------------------
class Config:
    sample_rate = 16000
    num_fft = 256
    hop_length = 64
    win_length = 256
    f_min = 0.0
    f_max = 8000.0
    f_max_loss = 8000.0
    num_mels = 32
    power = 1.0  # magnitude spectrogram (sqrt(re^2 + im^2))


def _round_up(x, m):
    return ((x + m - 1) // m) * m


# ----------------------------------------------------------------------------
# Deterministic parameter construction (librosa slaney mel filterbank, hann
# window, real-DFT matrices) — pure numpy glue.
# ----------------------------------------------------------------------------
def _hz_to_mel_slaney(f):
    f = np.asarray(f, dtype=np.float64)
    f_sp = 200.0 / 3
    mels = f / f_sp
    min_log_hz = 1000.0
    min_log_mel = min_log_hz / f_sp
    logstep = np.log(6.4) / 27.0
    log_region = f >= min_log_hz
    mels = np.where(log_region,
                    min_log_mel + np.log(np.maximum(f, min_log_hz) / min_log_hz) / logstep,
                    mels)
    return mels


def _mel_to_hz_slaney(m):
    m = np.asarray(m, dtype=np.float64)
    f_sp = 200.0 / 3
    freqs = m * f_sp
    min_log_hz = 1000.0
    min_log_mel = min_log_hz / f_sp
    logstep = np.log(6.4) / 27.0
    log_region = m >= min_log_mel
    freqs = np.where(log_region,
                     min_log_hz * np.exp(logstep * (m - min_log_mel)),
                     freqs)
    return freqs


def librosa_mel_filterbank(sr, n_fft, n_mels, fmin, fmax):
    """Replicates librosa.filters.mel(htk=False, norm='slaney'). Returns [n_mels, n_freqs]."""
    n_freqs = n_fft // 2 + 1
    fftfreqs = np.linspace(0.0, sr / 2.0, n_freqs)
    min_mel = _hz_to_mel_slaney(fmin)
    max_mel = _hz_to_mel_slaney(fmax)
    mels = np.linspace(min_mel, max_mel, n_mels + 2)
    mel_f = _mel_to_hz_slaney(mels)
    fdiff = np.diff(mel_f)
    ramps = mel_f[:, None] - fftfreqs[None, :]
    lower = -ramps[:-2] / fdiff[:-1, None]
    upper = ramps[2:] / fdiff[1:, None]
    weights = np.maximum(0.0, np.minimum(lower, upper))
    enorm = 2.0 / (mel_f[2:n_mels + 2] - mel_f[:n_mels])
    weights = weights * enorm[:, None]
    return weights.astype(np.float32)  # [n_mels, n_freqs]


def build_windowed_dft(n_fft, win_length):
    """Windowed real-DFT matrices (window folded in). Returns ([n_fft, n_freqs],)*2 float64."""
    n_freqs = n_fft // 2 + 1
    n = np.arange(win_length, dtype=np.float64)
    window = 0.5 - 0.5 * np.cos(2.0 * np.pi * n / win_length)  # periodic hann
    if win_length < n_fft:  # torchaudio centers the window inside n_fft
        pad_l = (n_fft - win_length) // 2
        window = np.pad(window, (pad_l, n_fft - win_length - pad_l))
    k = np.arange(n_freqs, dtype=np.float64)[None, :]   # [1, n_freqs]
    t = np.arange(n_fft, dtype=np.float64)[:, None]     # [n_fft, 1]
    ang = 2.0 * np.pi * k * t / n_fft
    dft_re = np.cos(ang) * window[:, None]               # [n_fft, n_freqs]
    dft_im = -np.sin(ang) * window[:, None]               # [n_fft, n_freqs]
    return dft_re, dft_im


def build_fused_dft(n_fft, win_length, nf_pad):
    """Fused, zero-padded [re | im] DFT matrix: [n_fft, 2*nf_pad] float32."""
    n_freqs = n_fft // 2 + 1
    dft_re, dft_im = build_windowed_dft(n_fft, win_length)
    fused = np.zeros((n_fft, 2 * nf_pad), dtype=np.float32)
    fused[:, :n_freqs] = dft_re
    fused[:, nf_pad:nf_pad + n_freqs] = dft_im
    return fused


# ----------------------------------------------------------------------------
# Pallas kernel: in-VMEM frame reconstruction -> fused windowed DFT ->
# power/magnitude -> mel projection -> clamp + log
# ----------------------------------------------------------------------------
def _mel_kernel(xm_ref, xt_ref, dft_ref, fb_ref, out_ref, *, power, n_shift, nf_pad):
    xm = xm_ref[0]                                    # (tm, hop)   hop rows of this tile
    xt = xt_ref[0]                                    # (tail, hop) overlap rows of next tile
    tm = xm.shape[0]
    xfull = jnp.concatenate([xm, xt], axis=0)         # (tm + tail, hop)
    # frame m = concat of hop-rows m .. m+n_shift-1  ->  (tm, n_fft)
    frames = jnp.concatenate([xfull[j:j + tm, :] for j in range(n_shift)], axis=1)

    # single fused [re | im] windowed-DFT matmul on the MXU
    y = jnp.dot(frames, dft_ref[...], preferred_element_type=jnp.float32)  # (tm, 2*nf_pad)
    re = y[:, :nf_pad]
    im = y[:, nf_pad:]
    spec = re * re + im * im                          # power-2 spectrogram
    if power == 1.0:
        spec = jnp.sqrt(spec)
    elif power != 2.0:
        spec = jnp.power(spec, power * 0.5)

    mel = jnp.dot(spec, fb_ref[...], preferred_element_type=jnp.float32)   # (tm, nm_pad)
    out_ref[0] = jnp.log(jnp.maximum(mel, 1e-5))


def mel_spectrogram(audio, config=Config, tm=512):
    """audio: [B, 1, T] float32  ->  [B, n_mels, n_frames] float32."""
    n_fft = config.num_fft
    hop = config.hop_length
    n_mels = config.num_mels
    n_freqs = n_fft // 2 + 1
    pad = (n_fft - hop) // 2

    # TODO(synk): streaming frame reconstruction assumes n_fft % hop == 0 (true for this config);
    # a non-integer overlap would need the materialized-frame fallback.
    assert n_fft % hop == 0, "kernel requires n_fft to be a multiple of hop_length"
    n_shift = n_fft // hop

    # --- glue: reflect pad + hop-row reshape (no frame materialization) ---
    audio = jnp.asarray(audio, jnp.float32)
    B = audio.shape[0]
    x = jnp.pad(audio[:, 0, :], ((0, 0), (pad, pad)), mode="reflect")   # [B, T + 2*pad]
    t_pad = x.shape[1]
    n_frames = (t_pad - n_fft) // hop + 1

    tail = max(8, _round_up(n_shift, 8))              # overlap rows fetched from the next tile
    tm_eff = min(_round_up(tm, tail), _round_up(n_frames, tail))
    n_tiles = -(-n_frames // tm_eff)
    n_frames_pad = n_tiles * tm_eff
    n_hops = n_frames_pad + tail
    total = n_hops * hop
    if total > t_pad:
        x = jnp.pad(x, ((0, 0), (0, total - t_pad)))  # zero tail, only feeds discarded frames
    x_h = x[:, :total].reshape(B, n_hops, hop)        # [B, n_hops, hop]

    # --- deterministic parameters (padded to MXU-friendly shapes) ---
    nf_pad = _round_up(n_freqs, 128)                  # 129 -> 256
    nm_pad = _round_up(n_mels, 128)                   # 32  -> 128 (lane-dense output)
    dft = jnp.asarray(build_fused_dft(n_fft, config.win_length, nf_pad))  # [n_fft, 2*nf_pad]
    fb = librosa_mel_filterbank(config.sample_rate, n_fft, n_mels,
                                config.f_min, config.f_max)               # [n_mels, n_freqs]
    fb_pad_np = np.zeros((nf_pad, nm_pad), dtype=np.float32)
    fb_pad_np[:n_freqs, :n_mels] = fb.T
    fb_pad = jnp.asarray(fb_pad_np)

    kernel = functools.partial(_mel_kernel, power=config.power,
                               n_shift=n_shift, nf_pad=nf_pad)

    blocks_per_tile = tm_eff // tail                  # tail-row block index stride

    out = pl.pallas_call(
        kernel,
        out_shape=jax.ShapeDtypeStruct((B, n_frames_pad, nm_pad), jnp.float32),
        grid_spec=pltpu.PrefetchScalarGridSpec(
            num_scalar_prefetch=0,
            grid=(B, n_tiles),
            in_specs=[
                # hop rows [i*tm, (i+1)*tm) of batch b
                pl.BlockSpec((1, tm_eff, hop), lambda b, i: (b, i, 0)),
                # overlap: first `tail` hop rows of the NEXT tile (same array, offset index_map)
                pl.BlockSpec((1, tail, hop),
                             lambda b, i: (b, (i + 1) * blocks_per_tile, 0)),
                # constant operands: index_map never changes -> stay resident in VMEM
                pl.BlockSpec((n_fft, 2 * nf_pad), lambda b, i: (0, 0)),
                pl.BlockSpec((nf_pad, nm_pad), lambda b, i: (0, 0)),
            ],
            out_specs=pl.BlockSpec((1, tm_eff, nm_pad), lambda b, i: (b, i, 0)),
        ),
        compiler_params=pltpu.CompilerParams(
            dimension_semantics=("parallel", "parallel")),
    )(x_h, x_h, dft, fb_pad)

    mel = out[:, :n_frames, :n_mels]                  # drop frame/mel padding
    return jnp.transpose(mel, (0, 2, 1))              # [B, n_mels, T']


# ----------------------------------------------------------------------------
# Pure-JAX reference (for a sanity check of the kernel math)
# ----------------------------------------------------------------------------
def mel_spectrogram_ref(audio, config=Config):
    n_fft, hop, n_mels = config.num_fft, config.hop_length, config.num_mels
    pad = (n_fft - hop) // 2
    x = jnp.pad(jnp.asarray(audio, jnp.float32)[:, 0, :], ((0, 0), (pad, pad)), mode="reflect")
    n_frames = (x.shape[1] - n_fft) // hop + 1
    idx = jnp.arange(n_frames)[:, None] * hop + jnp.arange(n_fft)[None, :]
    frames = x[:, idx]                                                    # [B, T', n_fft]
    dft_re, dft_im = build_windowed_dft(n_fft, config.win_length)
    fb = librosa_mel_filterbank(config.sample_rate, n_fft, n_mels,
                                config.f_min, config.f_max).T
    re = frames @ jnp.asarray(dft_re.astype(np.float32))
    im = frames @ jnp.asarray(dft_im.astype(np.float32))
    spec = re * re + im * im
    if config.power == 1.0:
        spec = jnp.sqrt(spec)
    elif config.power != 2.0:
        spec = jnp.power(spec, config.power * 0.5)
    mel = spec @ jnp.asarray(fb)
    mel = jnp.log(jnp.maximum(mel, 1e-5))
    return jnp.transpose(mel, (0, 2, 1))


if __name__ == "__main__":
    key = jax.random.PRNGKey(0)
    B, T = 2, 1024
    audio = jax.random.normal(key, (B, 1, T), dtype=jnp.float32)

    out = mel_spectrogram(audio)
    out = jax.block_until_ready(out)

    ref = jax.block_until_ready(mel_spectrogram_ref(audio))
    assert out.shape == ref.shape, (out.shape, ref.shape)
    np.testing.assert_allclose(np.asarray(out), np.asarray(ref), rtol=2e-4, atol=2e-4)

    print("KERNEL_OK")
</pallas_src>

<mosaic_0001>
module attributes {stable_mosaic.version = 11 : i64} {
  func.func @_mel_kernel(%arg0: i32, %arg1: i32, %arg2: memref<1x16x64xf32, #tpu.memory_space<vmem>>, %arg3: memref<1x8x64xf32, #tpu.memory_space<vmem>>, %arg4: memref<256x512xf32, #tpu.memory_space<vmem>>, %arg5: memref<256x128xf32, #tpu.memory_space<vmem>>, %arg6: memref<1x16x128xf32, #tpu.memory_space<vmem>>) attributes {dimension_semantics = [#tpu.dimension_semantics<parallel>, #tpu.dimension_semantics<parallel>], iteration_bounds = array<i64: 2, 1>, scalar_prefetch = 0 : i64, scratch_operands = 0 : i64, tpu.core_type = #tpu.core_type<tc>, window_params = [{transform_indices = @transform_0, window_bounds = array<i64: 1, 16, 64>}, {transform_indices = @transform_1, window_bounds = array<i64: 1, 8, 64>}, {pipeline_mode = #tpu.pipeline_mode<synchronous>, transform_indices = @transform_2, window_bounds = array<i64: 256, 512>}, {pipeline_mode = #tpu.pipeline_mode<synchronous>, transform_indices = @transform_3, window_bounds = array<i64: 256, 128>}, {transform_indices = @transform_4, window_bounds = array<i64: 1, 16, 128>}]} {
    %c0 = arith.constant 0 : index
    %c0_0 = arith.constant 0 : index
    %c0_1 = arith.constant 0 : index
    %0 = vector.load %arg2[%c0, %c0_0, %c0_1] : memref<1x16x64xf32, #tpu.memory_space<vmem>>, vector<1x16x64xf32>
    %1 = vector.shape_cast %0 : vector<1x16x64xf32> to vector<16x64xf32>
    %c0_2 = arith.constant 0 : index
    %c0_3 = arith.constant 0 : index
    %c0_4 = arith.constant 0 : index
    %2 = vector.load %arg3[%c0_2, %c0_3, %c0_4] : memref<1x8x64xf32, #tpu.memory_space<vmem>>, vector<1x8x64xf32>
    %3 = vector.shape_cast %2 : vector<1x8x64xf32> to vector<8x64xf32>
    %4 = tpu.concatenate %1, %3 in 0 : vector<16x64xf32>, vector<8x64xf32> -> vector<24x64xf32>
    %5 = vector.extract_strided_slice %4 {offsets = [0, 0], sizes = [16, 64], strides = [1, 1]} : vector<24x64xf32> to vector<16x64xf32>
    %6 = vector.extract_strided_slice %4 {offsets = [1, 0], sizes = [16, 64], strides = [1, 1]} : vector<24x64xf32> to vector<16x64xf32>
    %7 = vector.extract_strided_slice %4 {offsets = [2, 0], sizes = [16, 64], strides = [1, 1]} : vector<24x64xf32> to vector<16x64xf32>
    %8 = vector.extract_strided_slice %4 {offsets = [3, 0], sizes = [16, 64], strides = [1, 1]} : vector<24x64xf32> to vector<16x64xf32>
    %9 = tpu.concatenate %5, %6, %7, %8 in 1 : vector<16x64xf32>, vector<16x64xf32>, vector<16x64xf32>, vector<16x64xf32> -> vector<16x256xf32>
    %c0_5 = arith.constant 0 : index
    %c0_6 = arith.constant 0 : index
    %10 = vector.load %arg4[%c0_5, %c0_6] : memref<256x512xf32, #tpu.memory_space<vmem>>, vector<256x512xf32>
    %cst = arith.constant dense<0.000000e+00> : vector<16x512xf32>
    %11 = tpu.matmul %9, %10, %cst {dimension_numbers = #tpu.dot_dimension_numbers<[1], [0], [0], [1], [0, 0, 1, 1], [], []>} : vector<16x256xf32>, vector<256x512xf32>, vector<16x512xf32> -> vector<16x512xf32>
    %12 = vector.extract_strided_slice %11 {offsets = [0, 0], sizes = [16, 256], strides = [1, 1]} : vector<16x512xf32> to vector<16x256xf32>
    %13 = vector.extract_strided_slice %11 {offsets = [0, 256], sizes = [16, 256], strides = [1, 1]} : vector<16x512xf32> to vector<16x256xf32>
    %14 = arith.mulf %12, %12 : vector<16x256xf32>
    %15 = arith.mulf %13, %13 : vector<16x256xf32>
    %16 = arith.addf %14, %15 : vector<16x256xf32>
    %17 = math.sqrt %16 : vector<16x256xf32>
    %c0_7 = arith.constant 0 : index
    %c0_8 = arith.constant 0 : index
    %18 = vector.load %arg5[%c0_7, %c0_8] : memref<256x128xf32, #tpu.memory_space<vmem>>, vector<256x128xf32>
    %cst_9 = arith.constant dense<0.000000e+00> : vector<16x128xf32>
    %19 = tpu.matmul %17, %18, %cst_9 {dimension_numbers = #tpu.dot_dimension_numbers<[1], [0], [0], [1], [0, 0, 1, 1], [], []>} : vector<16x256xf32>, vector<256x128xf32>, vector<16x128xf32> -> vector<16x128xf32>
    %cst_10 = arith.constant 9.99999974E-6 : f32
    %20 = vector.broadcast %cst_10 : f32 to vector<16x128xf32>
    %21 = arith.maximumf %19, %20 : vector<16x128xf32>
    %22 = math.log %21 : vector<16x128xf32>
    %c0_11 = arith.constant 0 : index
    %c0_12 = arith.constant 0 : index
    %c0_13 = arith.constant 0 : index
    %23 = vector.load %arg6[%c0_11, %c0_12, %c0_13] : memref<1x16x128xf32, #tpu.memory_space<vmem>>, vector<1x16x128xf32>
    %24 = vector.shape_cast %23 : vector<1x16x128xf32> to vector<16x128xf32>
    %25 = vector.shape_cast %22 : vector<16x128xf32> to vector<1x16x128xf32>
    tpu.vector_store %arg6[%c0_11, %c0_12, %c0_13], %25 {strides = array<i32>} : memref<1x16x128xf32, #tpu.memory_space<vmem>>, vector<1x16x128xf32>,
    return
  }
  func.func @transform_0(%arg0: i32, %arg1: i32) -> (i32, i32, i32) {
    %c0_i32 = arith.constant 0 : i32
    %c0_i32_0 = arith.constant 0 : i32
    return %arg0, %arg1, %c0_i32 : i32, i32, i32
  }
  func.func @transform_1(%arg0: i32, %arg1: i32) -> (i32, i32, i32) {
    %c1_i32 = arith.constant 1 : i32
    %0 = arith.addi %arg1, %c1_i32 : i32
    %c2_i32 = arith.constant 2 : i32
    %1 = arith.muli %0, %c2_i32 : i32
    %c0_i32 = arith.constant 0 : i32
    %c0_i32_0 = arith.constant 0 : i32
    return %arg0, %1, %c0_i32 : i32, i32, i32
  }
  func.func @transform_2(%arg0: i32, %arg1: i32) -> (i32, i32) {
    %c0_i32 = arith.constant 0 : i32
    %c0_i32_0 = arith.constant 0 : i32
    %c0_i32_1 = arith.constant 0 : i32
    return %c0_i32, %c0_i32_0 : i32, i32
  }
  func.func @transform_3(%arg0: i32, %arg1: i32) -> (i32, i32) {
    %c0_i32 = arith.constant 0 : i32
    %c0_i32_0 = arith.constant 0 : i32
    %c0_i32_1 = arith.constant 0 : i32
    return %c0_i32, %c0_i32_0 : i32, i32
  }
  func.func @transform_4(%arg0: i32, %arg1: i32) -> (i32, i32, i32) {
    %c0_i32 = arith.constant 0 : i32
    %c0_i32_0 = arith.constant 0 : i32
    return %arg0, %arg1, %c0_i32 : i32, i32, i32
  }
}

</mosaic_0001>

<bundles_post_ra>
// kernel: tpu_custom_call.1
= control target key start
LH: loop header
LB: loop body
LE: loop exit
PB: predicated region body
PF: predicated region fallthrough
CT: control target
= control target key end

     0   :  { %s1649_s0 = inlined_call_operand.hbm [shape: f32[2,24,64], index: 0, kind: input, shape index: {}]   ;;  %s1650_s1 = inlined_call_operand.hbm [shape: f32[2,24,64], index: 1, kind: input, shape index: {}]   ;;  %s1651_s2 = inlined_call_operand.hbm [shape: f32[256,512], index: 2, kind: input, shape index: {}]   ;;  %s1652_s3 = inlined_call_operand.hbm [shape: f32[256,128], index: 3, kind: input, shape index: {}]   ;;  %s1653_s4 = inlined_call_operand.hbm [shape: f32[2,16,128], index: 4, kind: output, shape index: {}]  }
   0x1   :  { %1659 = sst [smem:[#allocation20_spill]] %s1649_s0 }
   0x2   :  { %1660 = sst [smem:[#allocation21_spill]] %s1651_s2 }
   0x3   :  { %1661 = sst [smem:[#allocation22_spill]] %s1652_s3 }
   0x4   :  { %9 = vsyncpa [#allocation3], 0 }
   0x5   :  { %11 = vsyncpa [#allocation3 + $0x1], 0 }
   0x6   :  { %12 = vsyncpa [#allocation6], 0 }
   0x7   :  { %14 = vsyncpa [#allocation6 + $0x1], 0 }
   0x8   :  { %15 = vsyncpa [#allocation9], 0 }
   0x9   :  { %16 = vsyncpa [#allocation4], 0 }
   0xa   :  { %18 = vsyncpa [#allocation4 + $0x1], 0  ;;  %s1403_s15 = smov 0   ;;  %s1405_s16 = smov 0  }
   0xb   :  { %s1407_s17 = smov 0   ;;  %s1409_s18 = smov 0  }
   0xc   :  { %s1411_s19 = smov 0   ;;  %s1413_s20 = smov 0  }
   0xd LB: > { %1662 = sst [smem:[#allocation16_spill]] %s1352_s17  ;;  %s1434_s21 = sadd.s32 4294967295, %s1364_s20   ;;  %s1364_s20 = sphi %s1413_s20, %s24_s20   ;;  %s1360_s19 = sphi %s1411_s19, %s1686_s19   ;;  %s1356_s18 = sphi %s1409_s18, %s1685_s18   ;;  %s1352_s17 = sphi %s1407_s17, %s1684_s17   ;;  %s1348_s16 = sphi %s1405_s16, %s1688_s16   ;;  %s1344_s15 = sphi %s1403_s15, %s1687_s15  }
   0xe   : > { %1663 = sst [smem:[#allocation17_spill]] %s1360_s19  ;;  %s954_s22 = sadd.s32 4294967294, %s1364_s20  }
   0xf   : > { %p58_p0 = scmp.ne.s32.totalorder %s1348_s16, %s1344_s15  ;;  %p1654_p1 = scmp.eq.s32.totalorder %s1434_s21, 0 }
  0x10   : > { %p164_p3 = scmp.eq.s32.totalorder %s954_s22, 1  ;;  %p955_p5 = scmp.ge.s32.totalorder %s1364_s20, 1 }
  0x11   : > { %p1443_p4 = por %p1654_p1, %p58_p0  ;;  %p171_p7 = scmp.lt.s32.totalorder %s1364_s20, 3 }
  0x12   : > { %p1448_p6 = por %p164_p3, %p58_p0  ;;  %s1366_s26 = smov [#allocation7]  }
  0x13   : > { %p1453_p8 = pnand %p955_p5, %p171_p7  ;;  %s183_s27 = sshll.u32 %s1366_s26, 4  ;;  %s184_s27 = int_to_ptr.vmem [resolvable:$true] %s183_s27 }
  0x14   : > { %s1665_s24 = scalar_select %p1448_p6, 1, 0 }
  0x15   : > { %p1060_p9 = pneg %p1453_p8  ;;  %s1367_s29 = smov [#allocation8]  }
  0x16   : > { %s196_s30 = sshll.u32 %s1367_s29, 4  ;;  %s1174_s5 = scalar_lea.vmem %s184_s27, 16384  ;;  %s197_s30 = int_to_ptr.vmem [resolvable:$true] %s196_s30 }
  0x17   : > { %p1462_p11 = pnand %p1060_p9, %p1654_p1  ;;  %p1175_p13 = scmp.ne.s32.totalorder %s184_s27, %s1174_s5 }
  0x18   : > { %p1182_p5 = scmp.lt.s32.totalorder %s184_s27, %s184_s27  ;;  %p1183_p7 = scmp.lt.s32.totalorder %s1174_s5, %s1174_s5 }
  0x19   : > { %p1165_p12 = pneg %p1462_p11 }
  0x1a   : > { %p1184_p10 = por %p1183_p7, %p1182_p5 }
  0x1b   : > { %p1177_p0 = pnand %p1175_p13, %p1165_p12 }
  0x1d   : > { %p1178_p3 = pneg %p1177_p0 }
  0x1f   : > { %p1185_p9 = pnand %p1184_p10, %p1178_p3 }
  0x21   : > { %1188 = shalt.err (!%p1185_p9)
}
  0x22   : > { %s1368_s6 = smov 512   ;;  %s1369_s7 = smov 32  }
  0x23   : > { %s1668_s2 = sld [smem:[#allocation21_spill]]  ;;  %s1200_s10 = scalar_lea.vmem %s197_s30, 4096 }
  0x24   : > { %p1201_p1 = scmp.ne.s32.totalorder %s197_s30, %s1200_s10  ;;  %p1208_p2 = scmp.lt.s32.totalorder %s197_s30, %s197_s30 }
  0x25   : > { %p1209_p6 = scmp.lt.s32.totalorder %s1200_s10, %s1200_s10 }
  0x26   : > { %p1203_p13 = pnand %p1201_p1, %p1165_p12 }
  0x27   : > { %p1210_p5 = por %p1209_p6, %p1208_p2 }
  0x28   : > { %p1204_p0 = pneg %p1203_p13 }
  0x29   : > { %1063 = dma.hbm_to_vmem [thread:$0]  (!%p1462_p11), %s1668_s2, 16384, %s184_s27, [#allocation6], %s1368_s6, %s1368_s6, %s1369_s7  }
  0x2a   : > { %p1211_p10 = pnand %p1210_p5, %p1204_p0 }
  0x2c   : > { %1214 = shalt.err (!%p1211_p10)
}
  0x2d   : > { %s1655_s11 = smov 128   ;;  %s1371_s12 = smov 8  }
  0x2e   : > { %s1669_s3 = sld [smem:[#allocation22_spill]]  ;;  %s36_s22 = sadd.s32 1, %s1360_s19 }
  0x2f   : > { %s45_s26 = sadd.s32 1, %s1352_s17  ;;  %p38_p1 = scmp.ge.s32.totalorder %s36_s22, 2 }
  0x30   : > { %p52_p2 = scmp.ne.s32.totalorder %s1352_s17, %s1348_s16  ;;  %p53_p6 = scmp.eq.s32.totalorder %s1364_s20, 0 }
  0x31   : > { %p1080_p12 = scmp.lt.s32.totalorder %s1364_s20, 2  ;;  %s1690_s22 = smov (%p38_p1, %s36_s22), 0 }
  0x32   : > { %1670 = sst [smem:[#allocation18_spill]] %s1690_s22  ;;  %p54_p3 = por %p53_p6, %p52_p2 }
  0x33   : > { %p1671_p7 = scmp.eq.s32.totalorder %s1434_s21, 1  ;;  %s40_s28 = ssub.s32 %s1360_s19, %s1690_s22 }
  0x34   : > { %1066 = dma.hbm_to_vmem [thread:$0]  (!%p1462_p11), %s1669_s3, 4096, %s197_s30, [#allocation9], %s1655_s11, %s1655_s11, %s1371_s12  }
  0x35   : > { %p1497_p9 = por %p1671_p7, %p52_p2  ;;  %s1504_s29 = sand.u32 1, %s1352_s17  }
  0x36   : > { %p43_p11 = scmp.eq.s32.totalorder %s40_s28, 0  ;;  %s959_s30 = sshll.u32 %s1504_s29, 4 }
  0x37   : > { %s1045_s5 = smul.u32 384, %s1360_s19  ;;  %s1674_s0 = sld [smem:[#allocation20_spill]] }
  0x38   : > { %s1509_s6 = scalar_select %p43_p11, %s1352_s17, %s45_s26  }
  0x39   : > { %s214_s10 = scalar_lea.vmem [#allocation2], %s959_s30  ;;  %p1516_p13 = pnand %p1080_p12, %p54_p3 }
  0x3a   : > { %1673 = sst [smem:[#allocation19_spill]] %s1509_s6  ;;  %s229_s13 = sshll.u32 %s214_s10, 4  ;;  %s230_s13 = int_to_ptr.vmem [resolvable:$true] %s229_s13 }
  0x3b   : > { %s239_s11 = sand.u32 1, %s1364_s20   ;;  %s211_s28 = scalar_lea.sflag [#allocation3], %s1504_s29 }
  0x3c   : > { %p1217_p0 = pneg %p1516_p13  ;;  %s1228_s26 = scalar_lea.vmem %s230_s13, 256 }
  0x3d   : > { %s227_s9 = scalar_lea.hbm %s1674_s0, %s1045_s5  ;;  %p1229_p5 = scmp.ne.s32.totalorder %s230_s13, %s1228_s26 }
  0x3e   : > { %s1372_s30 = smov [#allocation2]  }
  0x3f   : > { %p1231_p10 = pnand %p1229_p5, %p1217_p0  ;;  %s1233_s7 = sshll.u32 %s1372_s30, 4  ;;  %s1234_s7 = int_to_ptr.vmem [resolvable:$false] %s1233_s7 }
  0x40   : > { %s1235_s8 = scalar_lea.vmem %s1234_s7, 512  ;;  %p1236_p2 = scmp.lt.s32.totalorder %s230_s13, %s1234_s7 }
  0x41   : > { %p1232_p1 = pneg %p1231_p10  ;;  %p1237_p6 = scmp.lt.s32.totalorder %s1235_s8, %s1228_s26 }
  0x43   : > { %p1238_p12 = por %p1237_p6, %p1236_p2 }
  0x45   : > { %p1239_p3 = pnand %p1238_p12, %p1232_p1 }
  0x47   : > { %1242 = shalt.err (!%p1239_p3)
}
  0x48   : > { %s1676_s10 = smov 128   ;;  %s961_s0 = sshll.u32 %s1504_s29, 3 }
  0x49   : > { %1070 = dma.hbm_to_vmem [thread:$0]  (!%p1516_p13), %s227_s9, 256, %s230_s13, %s211_s28, %s1676_s10, %s1676_s10, %s1371_s12  }
  0x4a   : > { %s866_s30 = scalar_lea.hbm %s1650_s1, %s1045_s5  ;;  %s243_s19 = scalar_lea.vmem [#allocation5], %s961_s0 }
  0x4b   : > { %s867_s22 = scalar_lea.hbm %s866_s30, 256  ;;  %s254_s7 = sshll.u32 %s243_s19, 4  ;;  %s255_s7 = int_to_ptr.vmem [resolvable:$true] %s254_s7 }
  0x4c   : > { %s240_s26 = scalar_lea.sflag [#allocation6], %s239_s11  ;;  %s1256_s8 = scalar_lea.vmem %s255_s7, 128 }
  0x4d   : > { %p1257_p7 = scmp.ne.s32.totalorder %s255_s7, %s1256_s8  ;;  %s1373_s6 = smov [#allocation5]  }
  0x4e   : > { %s1261_s17 = sshll.u32 %s1373_s6, 4  ;;  %s1262_s17 = int_to_ptr.vmem [resolvable:$false] %s1261_s17 }
  0x4f   : > { %p1259_p11 = pnand %p1257_p7, %p1217_p0  ;;  %s1263_s12 = scalar_lea.vmem %s1262_s17, 256 }
  0x50   : > { %p1264_p10 = scmp.lt.s32.totalorder %s255_s7, %s1262_s17  ;;  %p1265_p1 = scmp.lt.s32.totalorder %s1263_s12, %s1256_s8 }
  0x51   : > { %p1260_p5 = pneg %p1259_p11 }
  0x52   : > { %p1266_p2 = por %p1265_p1, %p1264_p10 }
  0x54   : > { %p1267_p6 = pnand %p1266_p2, %p1260_p5 }
  0x56   : > { %1270 = shalt.err (!%p1267_p6)
}
  0x57   : > { %1073 = dma.hbm_to_vmem [thread:$0]  (!%p1516_p13), %s867_s22, 128, %s255_s7, %s240_s26  }
  0x58   : > { %263 = sbr.rel (%p1453_p8) target bundleno = 680 (0x2a8), region = 36  ;;  %s1544_s0 = sand.u32 (!%p1453_p8), 1, %s1348_s16  }
  0x59   : > { %s964_s2 = sshll.u32 (!%p1453_p8), %s1544_s0, 4  ;;  %s266_s3 = scalar_lea.sflag (!%p1453_p8), [#allocation3], %s1544_s0 }
  0x5a   : > { %s269_s17 = scalar_lea.vmem (!%p1453_p8), [#allocation2], %s964_s2 }
  0x5d   : > { %1323 = dma.done.wait (%p1443_p4), %s266_s3, 256  }
  0x5e   : > { %1325 = vsyncadd (%p1443_p4), %s266_s3, 4294967040  ;;  %s274_s19 = sand.u32 1, %s1434_s21   ;;  %s965_s25 = sshll.u32 %s1544_s0, 3 }
  0x5f   : > { %s275_s11 = scalar_lea.sflag [#allocation6], %s274_s19  ;;  %s278_s22 = scalar_lea.vmem [#allocation5], %s965_s25 }
  0x60   : > { %1327 = dma.done.wait (%p1443_p4), %s275_s11, 128  }
  0x61   : > { %1329 = vsyncadd (%p1443_p4), %s275_s11, 4294967168  ;;  %p1677_p8 = scmp.eq.s32.totalorder %s1434_s21, 0 }
  0x63   : > { %1331 = dma.done.wait (%p1677_p8), [#allocation6], 16384   ;;  %p1678_p13 = pmov %p1677_p8 }
  0x64   : > { %p1679_p0 = pmov %p1677_p8 }
  0x65   : > { %1333 = vsyncadd (%p1678_p13), [#allocation6], 4294950912 }
  0x66   : > { %1335 = dma.done.wait (%p1679_p0), [#allocation9], 4096   ;;  %p1680_p12 = pmov %p1679_p0 }
  0x67   : > { %v1568_v0 = vld [vmem:[%s269_s17] sm:$0xff]  ;;  %v1570_v1 = vld [vmem:[%s269_s17 + $0x8] sm:$0xff]  ;;  %vm330_vm0 = vcmask 1046528   ;;  %vm350_vm1 = vcmask 1044480   ;;  %s1374_s21 = smov 64   ;;  %vm342_vm2 = vcmask 1045504  }
  0x68   : > { %1337 = vsyncadd (%p1680_p12), [#allocation9], 4294963200  ;;  %v1572_v2 = vld [vmem:[%s278_s22] sm:$0xff]  ;;  %v331_v3 = vrot.slane %v1568_v0, 1  ;;  %v332_v4 = vrot.slane %v1570_v1, 1  ;;  %v351_v5 = vrot.slane %v1568_v0, 3 }
  0x69   : > { %v352_v6 = vrot.slane %v1570_v1, 3  ;;  %v428_v7 = vld [vmem:[#allocation7 + $0x1e8] sm:$0xff]  ;;  %v430_v8 = vld [vmem:[#allocation7 + $0x1f8] sm:$0xff]  ;;  %v334_v9 = vrot.slane %v1572_v2, 1  ;;  %v354_v10 = vrot.slane %v1572_v2, 3  ;;  %v427_v11 = vld [vmem:[#allocation7 + $0x1e0] sm:$0xff] }
  0x6a   : > { %495 = vmatprep.subr.mxu0 %v428_v7  ;;  %572 = vmatprep.subr.mxu1 %v430_v8  ;;  %v429_v12 = vld [vmem:[#allocation7 + $0x1f0] sm:$0xff]  ;;  %v424_v13 = vld [vmem:[#allocation7 + $0x1c8] sm:$0xff]  ;;  %v333_v14 = vsel %vm330_vm0, %v331_v3, %v332_v4  ;;  %v426_v16 = vld [vmem:[#allocation7 + $0x1d8] sm:$0xff]  ;;  %vm362_vm3 = vcmask 523264   ;;  %s315_s23 = scalar_lea.vmem [#allocation10], %s964_s2  ;;  %s974_s5 = sshll.u32 %s1356_s18, 8 }
  0x6b   : > { %v353_v15 = vsel %vm350_vm1, %v351_v5, %v352_v6  ;;  %496 = vmatpush1.msra.mxu0 %v427_v11  ;;  %573 = vmatpush1.msra.mxu1 %v429_v12  ;;  %v423_v17 = vld [vmem:[#allocation7 + $0x1c0] sm:$0xff]  ;;  %v425_v18 = vld [vmem:[#allocation7 + $0x1d0] sm:$0xff]  ;;  %v335_v20 = vsel %vm330_vm0, %v332_v4, %v334_v9  ;;  %v355_v21 = vsel %vm350_vm1, %v352_v6, %v354_v10  ;;  %v420_v22 = vld [vmem:[#allocation7 + $0x1a8] sm:$0xff]  ;;  %s820_s29 = sshll.u32 %s315_s23, 4  ;;  %s1601_s13 = scalar_lea.hbm %s1653_s4, %s974_s5  ;;  %s1596_s29 = int_to_ptr.vmem [resolvable:$true] %s820_s29 }
  0x6c   : > { %v1141_v19 = vpack.i.bf16 %v333_v14, %v353_v15  ;;  %497 = vmatprep.subr.mxu0 %v424_v13  ;;  %574 = vmatprep.subr.mxu1 %v426_v16  ;;  %v422_v23 = vld [vmem:[#allocation7 + $0x1b8] sm:$0xff]  ;;  %v419_v24 = vld [vmem:[#allocation7 + $0x1a0] sm:$0xff]  ;;  %v421_v25 = vld [vmem:[#allocation7 + $0x1b0] sm:$0xff]  ;;  %v1146_v27 = vpack.i.bf16 %v335_v20, %v355_v21  ;;  %s805_s14 = scalar_lea.sflag [#allocation4], %s1544_s0  ;;  %s1272_s28 = scalar_lea.vmem %s1596_s29, 256 }
  0x6d   : > { %498 = vmatpush1.msra.mxu0 %v423_v17  ;;  %575 = vmatpush1.msra.mxu1 %v425_v18  ;;  %v416_v26 = vld [vmem:[#allocation7 + $0x188] sm:$0xff]  ;;  %v418_v28 = vld [vmem:[#allocation7 + $0x198] sm:$0xff]  ;;  %v415_v29 = vld [vmem:[#allocation7 + $0x180] sm:$0xff]  ;;  %p1273_p4 = scmp.ne.s32.totalorder %s1596_s29, %s1272_s28  ;;  %s1375_s18 = smov [#allocation10]  }
  0x6e   : > { %1142 = vrot.lane.b32.xlu0 %v1141_v19, %s1374_s21  ;;  %499 = vmatprep.subr.mxu0 %v420_v22  ;;  %v417_v30 = vld [vmem:[#allocation7 + $0x190] sm:$0xff]  ;;  %v412_v31 = vld [vmem:[#allocation7 + $0x168] sm:$0xff]  ;;  %v414_v32 = vld [vmem:[#allocation7 + $0x178] sm:$0xff]  ;;  %s1276_s10 = sshll.u32 %s1375_s18, 4  ;;  %s1277_s10 = int_to_ptr.vmem [resolvable:$false] %s1276_s10 }
  0x6f   : > { %576 = vmatprep.subr.mxu1 %v422_v23  ;;  %500 = vmatpush1.msra.mxu0 %v419_v24  ;;  %v411_v33 = vld [vmem:[#allocation7 + $0x160] sm:$0xff]  ;;  %v413_v34 = vld [vmem:[#allocation7 + $0x170] sm:$0xff]  ;;  %v408_v35 = vld [vmem:[#allocation7 + $0x148] sm:$0xff]  ;;  %p1274_p3 = pnand %p1273_p4, %p1497_p9  ;;  %s1278_s30 = scalar_lea.vmem %s1277_s10, 512 }
  0x70   : > { %577 = vmatpush1.msra.mxu1 %v421_v25  ;;  %501 = vmatprep.subr.mxu0 %v416_v26  ;;  %v410_v36 = vld [vmem:[#allocation7 + $0x158] sm:$0xff]  ;;  %v407_v37 = vld [vmem:[#allocation7 + $0x140] sm:$0xff]  ;;  %v409_v38 = vld [vmem:[#allocation7 + $0x150] sm:$0xff]  ;;  %p1279_p11 = scmp.lt.s32.totalorder %s1596_s29, %s1277_s10  ;;  %p1280_p5 = scmp.lt.s32.totalorder %s1278_s30, %s1272_s28 }
  0x71   : > { %578 = vmatprep.subr.mxu1 %v418_v28  ;;  %502 = vmatpush1.msra.mxu0 %v415_v29  ;;  %v404_v39 = vld [vmem:[#allocation7 + $0x128] sm:$0xff]  ;;  %v406_v40 = vld [vmem:[#allocation7 + $0x138] sm:$0xff]  ;;  %v403_v41 = vld [vmem:[#allocation7 + $0x120] sm:$0xff]  ;;  %p1275_p7 = pneg %p1274_p3 }
  0x72   : > { %1147 = vrot.lane.b32.xlu0 %v1146_v27, %s1374_s21  ;;  %579 = vmatpush1.msra.mxu1 %v417_v30  ;;  %v405_v42 = vld [vmem:[#allocation7 + $0x130] sm:$0xff]  ;;  %v400_v43 = vld [vmem:[#allocation7 + $0x108] sm:$0xff]  ;;  %v402_v44 = vld [vmem:[#allocation7 + $0x118] sm:$0xff]  ;;  %p1281_p10 = por %p1280_p5, %p1279_p11 }
  0x73   : > { %503 = vmatprep.subr.mxu0 %v412_v31  ;;  %580 = vmatprep.subr.mxu1 %v414_v32  ;;  %v399_v45 = vld [vmem:[#allocation7 + $0x100] sm:$0xff]  ;;  %v401_v46 = vld [vmem:[#allocation7 + $0x110] sm:$0xff]  ;;  %v396_v47 = vld [vmem:[#allocation7 + $0xe8] sm:$0xff] }
  0x74   : > { %504 = vmatpush1.msra.mxu0 %v411_v33  ;;  %581 = vmatpush1.msra.mxu1 %v413_v34  ;;  %v398_v48 = vld [vmem:[#allocation7 + $0xf8] sm:$0xff]  ;;  %v395_v49 = vld [vmem:[#allocation7 + $0xe0] sm:$0xff]  ;;  %v397_v50 = vld [vmem:[#allocation7 + $0xf0] sm:$0xff]  ;;  %p1282_p1 = pnand %p1281_p10, %p1275_p7 }
  0x75   : > { %505 = vmatprep.subr.mxu0 %v408_v35  ;;  %582 = vmatprep.subr.mxu1 %v410_v36  ;;  %v392_v51 = vld [vmem:[#allocation7 + $0xc8] sm:$0xff]  ;;  %v394_v52 = vld [vmem:[#allocation7 + $0xd8] sm:$0xff]  ;;  %v391_v53 = vld [vmem:[#allocation7 + $0xc0] sm:$0xff] }
  0x76   : > { %506 = vmatpush1.msra.mxu0 %v407_v37  ;;  %583 = vmatpush1.msra.mxu1 %v409_v38  ;;  %v393_v54 = vld [vmem:[#allocation7 + $0xd0] sm:$0xff]  ;;  %v388_v55 = vld [vmem:[#allocation7 + $0xa8] sm:$0xff]  ;;  %v390_v56 = vld [vmem:[#allocation7 + $0xb8] sm:$0xff] }
  0x77   : > { %507 = vmatprep.subr.mxu0 %v404_v39  ;;  %584 = vmatprep.subr.mxu1 %v406_v40  ;;  %v387_v57 = vld [vmem:[#allocation7 + $0xa0] sm:$0xff]  ;;  %v389_v58 = vld [vmem:[#allocation7 + $0xb0] sm:$0xff]  ;;  %v384_v59 = vld [vmem:[#allocation7 + $0x88] sm:$0xff] }
  0x78   : > { %508 = vmatpush1.msra.mxu0 %v403_v41  ;;  %585 = vmatpush1.msra.mxu1 %v405_v42  ;;  %v386_v60 = vld [vmem:[#allocation7 + $0x98] sm:$0xff]  ;;  %v383_v61 = vld [vmem:[#allocation7 + $0x80] sm:$0xff]  ;;  %v385_v62 = vld [vmem:[#allocation7 + $0x90] sm:$0xff] }
  0x79   : > { %509 = vmatprep.subr.mxu0 %v400_v43  ;;  %586 = vmatprep.subr.mxu1 %v402_v44  ;;  %v380_v63 = vld [vmem:[#allocation7 + $0x68] sm:$0xff]  ;;  %v382_v3 = vld [vmem:[#allocation7 + $0x78] sm:$0xff]  ;;  %v379_v4 = vld [vmem:[#allocation7 + $0x60] sm:$0xff] }
  0x7a   : > { %510 = vmatpush1.msra.mxu0 %v399_v45  ;;  %587 = vmatpush1.msra.mxu1 %v401_v46  ;;  %v381_v5 = vld [vmem:[#allocation7 + $0x70] sm:$0xff]  ;;  %v376_v6 = vld [vmem:[#allocation7 + $0x48] sm:$0xff]  ;;  %v378_v7 = vld [vmem:[#allocation7 + $0x58] sm:$0xff] }
  0x7b   : > { %511 = vmatprep.subr.mxu0 %v396_v47  ;;  %588 = vmatprep.subr.mxu1 %v398_v48  ;;  %v375_v8 = vld [vmem:[#allocation7 + $0x40] sm:$0xff]  ;;  %v377_v9 = vld [vmem:[#allocation7 + $0x50] sm:$0xff]  ;;  %v372_v10 = vld [vmem:[#allocation7 + $0x28] sm:$0xff] }
  0x7c   : > { %512 = vmatpush1.msra.mxu0 %v395_v49  ;;  %589 = vmatpush1.msra.mxu1 %v397_v50  ;;  %v374_v11 = vld [vmem:[#allocation7 + $0x38] sm:$0xff]  ;;  %v371_v12 = vld [vmem:[#allocation7 + $0x20] sm:$0xff]  ;;  %v373_v13 = vld [vmem:[#allocation7 + $0x30] sm:$0xff] }
  0x7d   : > { %513 = vmatprep.subr.mxu0 %v392_v51  ;;  %590 = vmatprep.subr.mxu1 %v394_v52  ;;  %v368_v14 = vld [vmem:[#allocation7 + $0x8] sm:$0xff]  ;;  %v370_v15 = vld [vmem:[#allocation7 + $0x18] sm:$0xff]  ;;  %v367_v16 = vld [vmem:[#allocation7] sm:$0xff] }
  0x7e   : > { %514 = vmatpush1.msra.mxu0 %v391_v53  ;;  %591 = vmatpush1.msra.mxu1 %v393_v54  ;;  %v369_v17 = vld [vmem:[#allocation7 + $0x10] sm:$0xff]  ;;  %v492_v18 = vld [vmem:[#allocation7 + $0x3e8] sm:$0xff]  ;;  %v494_v19 = vld [vmem:[#allocation7 + $0x3f8] sm:$0xff] }
  0x7f   : > { %515 = vmatprep.subr.mxu0 %v388_v55  ;;  %592 = vmatprep.subr.mxu1 %v390_v56  ;;  %v491_v20 = vld [vmem:[#allocation7 + $0x3e0] sm:$0xff]  ;;  %v493_v21 = vld [vmem:[#allocation7 + $0x3f0] sm:$0xff]  ;;  %v488_v22 = vld [vmem:[#allocation7 + $0x3c8] sm:$0xff] }
  0x80   : > { %516 = vmatpush1.msra.mxu0 %v387_v57  ;;  %593 = vmatpush1.msra.mxu1 %v389_v58  ;;  %v490_v23 = vld [vmem:[#allocation7 + $0x3d8] sm:$0xff]  ;;  %v487_v24 = vld [vmem:[#allocation7 + $0x3c0] sm:$0xff]  ;;  %v489_v25 = vld [vmem:[#allocation7 + $0x3d0] sm:$0xff] }
  0x81   : > { %517 = vmatprep.subr.mxu0 %v384_v59  ;;  %594 = vmatprep.subr.mxu1 %v386_v60  ;;  %v484_v26 = vld [vmem:[#allocation7 + $0x3a8] sm:$0xff]  ;;  %v486_v27 = vld [vmem:[#allocation7 + $0x3b8] sm:$0xff]  ;;  %v483_v28 = vld [vmem:[#allocation7 + $0x3a0] sm:$0xff] }
  0x82   : > { %518 = vmatpush1.msra.mxu0 %v383_v61  ;;  %595 = vmatpush1.msra.mxu1 %v385_v62  ;;  %v485_v29 = vld [vmem:[#allocation7 + $0x3b0] sm:$0xff]  ;;  %v480_v30 = vld [vmem:[#allocation7 + $0x388] sm:$0xff]  ;;  %v482_v31 = vld [vmem:[#allocation7 + $0x398] sm:$0xff] }
  0x83   : > { %519 = vmatprep.subr.mxu0 %v380_v63  ;;  %596 = vmatprep.subr.mxu1 %v382_v3  ;;  %v479_v32 = vld [vmem:[#allocation7 + $0x380] sm:$0xff]  ;;  %v481_v33 = vld [vmem:[#allocation7 + $0x390] sm:$0xff]  ;;  %v476_v34 = vld [vmem:[#allocation7 + $0x368] sm:$0xff] }
  0x84   : > { %520 = vmatpush1.msra.mxu0 %v379_v4  ;;  %597 = vmatpush1.msra.mxu1 %v381_v5  ;;  %v478_v35 = vld [vmem:[#allocation7 + $0x378] sm:$0xff]  ;;  %v475_v36 = vld [vmem:[#allocation7 + $0x360] sm:$0xff]  ;;  %v477_v37 = vld [vmem:[#allocation7 + $0x370] sm:$0xff] }
  0x85   : > { %521 = vmatprep.subr.mxu0 %v376_v6  ;;  %598 = vmatprep.subr.mxu1 %v378_v7  ;;  %v472_v38 = vld [vmem:[#allocation7 + $0x348] sm:$0xff]  ;;  %v474_v39 = vld [vmem:[#allocation7 + $0x358] sm:$0xff]  ;;  %v471_v40 = vld [vmem:[#allocation7 + $0x340] sm:$0xff] }
  0x86   : > { %522 = vmatpush1.msra.mxu0 %v375_v8  ;;  %599 = vmatpush1.msra.mxu1 %v377_v9  ;;  %v473_v41 = vld [vmem:[#allocation7 + $0x350] sm:$0xff]  ;;  %v468_v42 = vld [vmem:[#allocation7 + $0x328] sm:$0xff]  ;;  %v470_v43 = vld [vmem:[#allocation7 + $0x338] sm:$0xff] }
  0x87   : > { %523 = vmatprep.subr.mxu0 %v372_v10  ;;  %600 = vmatprep.subr.mxu1 %v374_v11  ;;  %v467_v44 = vld [vmem:[#allocation7 + $0x320] sm:$0xff]  ;;  %v469_v45 = vld [vmem:[#allocation7 + $0x330] sm:$0xff]  ;;  %v464_v46 = vld [vmem:[#allocation7 + $0x308] sm:$0xff] }
  0x88   : > { %524 = vmatpush1.msra.mxu0 %v371_v12  ;;  %601 = vmatpush1.msra.mxu1 %v373_v13  ;;  %v466_v47 = vld [vmem:[#allocation7 + $0x318] sm:$0xff]  ;;  %v463_v48 = vld [vmem:[#allocation7 + $0x300] sm:$0xff]  ;;  %v465_v49 = vld [vmem:[#allocation7 + $0x310] sm:$0xff] }
  0x89   : > { %525 = vmatprep.subr.mxu0 %v368_v14  ;;  %602 = vmatprep.subr.mxu1 %v370_v15  ;;  %v460_v50 = vld [vmem:[#allocation7 + $0x2e8] sm:$0xff]  ;;  %v462_v51 = vld [vmem:[#allocation7 + $0x2f8] sm:$0xff]  ;;  %v459_v52 = vld [vmem:[#allocation7 + $0x2e0] sm:$0xff] }
  0x8a   : > { %526 = vmatpush1.msra.mxu0 %v367_v16  ;;  %603 = vmatpush1.msra.mxu1 %v369_v17  ;;  %v461_v53 = vld [vmem:[#allocation7 + $0x2f0] sm:$0xff]  ;;  %v456_v54 = vld [vmem:[#allocation7 + $0x2c8] sm:$0xff]  ;;  %v458_v55 = vld [vmem:[#allocation7 + $0x2d8] sm:$0xff] }
  0x8b   : > { %527 = vmatprep.subr.mxu0 %v492_v18  ;;  %604 = vmatprep.subr.mxu1 %v494_v19  ;;  %v455_v56 = vld [vmem:[#allocation7 + $0x2c0] sm:$0xff]  ;;  %v457_v57 = vld [vmem:[#allocation7 + $0x2d0] sm:$0xff]  ;;  %v452_v58 = vld [vmem:[#allocation7 + $0x2a8] sm:$0xff] }
  0x8c   : > { %528 = vmatpush2.msra.mxu0 %v491_v20  ;;  %605 = vmatpush2.msra.mxu1 %v493_v21  ;;  %v454_v59 = vld [vmem:[#allocation7 + $0x2b8] sm:$0xff]  ;;  %v451_v60 = vld [vmem:[#allocation7 + $0x2a0] sm:$0xff]  ;;  %v453_v61 = vld [vmem:[#allocation7 + $0x2b0] sm:$0xff] }
  0x8d   : > { %529 = vmatprep.subr.mxu0 %v488_v22  ;;  %606 = vmatprep.subr.mxu1 %v490_v23  ;;  %v448_v62 = vld [vmem:[#allocation7 + $0x288] sm:$0xff]  ;;  %v450_v63 = vld [vmem:[#allocation7 + $0x298] sm:$0xff]  ;;  %v447_v3 = vld [vmem:[#allocation7 + $0x280] sm:$0xff]  ;;  %v343_v22 = vrot.slane %v1568_v0, 2  ;;  %v344_v23 = vrot.slane %v1570_v1, 2 }
  0x8e   : > { %530 = vmatpush2.msra.mxu0 %v487_v24  ;;  %607 = vmatpush2.msra.mxu1 %v489_v25  ;;  %v449_v4 = vld [vmem:[#allocation7 + $0x290] sm:$0xff]  ;;  %v444_v5 = vld [vmem:[#allocation7 + $0x268] sm:$0xff]  ;;  %v446_v6 = vld [vmem:[#allocation7 + $0x278] sm:$0xff] }
  0x8f   : > { %531 = vmatprep.subr.mxu0 %v484_v26  ;;  %608 = vmatprep.subr.mxu1 %v486_v27  ;;  %v443_v7 = vld [vmem:[#allocation7 + $0x260] sm:$0xff]  ;;  %v445_v8 = vld [vmem:[#allocation7 + $0x270] sm:$0xff]  ;;  %v440_v9 = vld [vmem:[#allocation7 + $0x248] sm:$0xff]  ;;  %v345_v25 = vsel %vm342_vm2, %v343_v22, %v344_v23  ;;  %v346_v26 = vrot.slane %v1572_v2, 2 }
  0x90   : > { %532 = vmatpush2.msra.mxu0 %v483_v28  ;;  %609 = vmatpush2.msra.mxu1 %v485_v29  ;;  %v442_v10 = vld [vmem:[#allocation7 + $0x258] sm:$0xff]  ;;  %v439_v11 = vld [vmem:[#allocation7 + $0x240] sm:$0xff]  ;;  %v441_v12 = vld [vmem:[#allocation7 + $0x250] sm:$0xff] }
  0x91   : > { %533 = vmatprep.subr.mxu0 %v480_v30  ;;  %610 = vmatprep.subr.mxu1 %v482_v31  ;;  %v436_v13 = vld [vmem:[#allocation7 + $0x228] sm:$0xff]  ;;  %v438_v14 = vld [vmem:[#allocation7 + $0x238] sm:$0xff]  ;;  %v435_v15 = vld [vmem:[#allocation7 + $0x220] sm:$0xff] }
  0x92   : > { %534 = vmatpush2.msra.mxu0 %v479_v32  ;;  %611 = vmatpush2.msra.mxu1 %v481_v33  ;;  %v437_v16 = vld [vmem:[#allocation7 + $0x230] sm:$0xff]  ;;  %v432_v17 = vld [vmem:[#allocation7 + $0x208] sm:$0xff]  ;;  %v434_v18 = vld [vmem:[#allocation7 + $0x218] sm:$0xff]  ;;  %v347_v33 = vsel %vm342_vm2, %v344_v23, %v346_v26 }
  0x93   : > { %535 = vmatprep.subr.mxu0 %v476_v34  ;;  %612 = vmatprep.subr.mxu1 %v478_v35  ;;  %v431_v19 = vld [vmem:[#allocation7 + $0x200] sm:$0xff]  ;;  %v433_v20 = vld [vmem:[#allocation7 + $0x210] sm:$0xff]  ;;  %v720_v21 = vld [vmem:[#allocation8 + $0xf8] sm:$0xff] }
  0x94   : > { %536 = vmatpush2.msra.mxu0 %v475_v36  ;;  %613 = vmatpush2.msra.mxu1 %v477_v37  ;;  %v704_v31 = vld [vmem:[#allocation8 + $0x78] sm:$0xff]  ;;  %v719_v34 = vld [vmem:[#allocation8 + $0xf0] sm:$0xff] }
  0x95   : > { %537 = vmatprep.subr.mxu0 %v472_v38  ;;  %614 = vmatprep.subr.mxu1 %v474_v39  ;;  %v703_v38 = vld [vmem:[#allocation8 + $0x70] sm:$0xff]  ;;  %v702_v39 = vld [vmem:[#allocation8 + $0x68] sm:$0xff] }
  0x96   : > { %538 = vmatpush2.msra.mxu0 %v471_v40  ;;  %615 = vmatpush2.msra.mxu1 %v473_v41  ;;  %v717_v40 = vld [vmem:[#allocation8 + $0xe0] sm:$0xff] }
  0x97   : > { %539 = vmatprep.subr.mxu0 %v468_v42  ;;  %616 = vmatprep.subr.mxu1 %v470_v43  ;;  %v701_v41 = vld [vmem:[#allocation8 + $0x60] sm:$0xff]  ;;  %v700_v42 = vld [vmem:[#allocation8 + $0x58] sm:$0xff]  ;;  %v715_v43 = vld [vmem:[#allocation8 + $0xd0] sm:$0xff] }
  0x98   : > { %540 = vmatpush2.msra.mxu0 %v467_v44  ;;  %617 = vmatpush2.msra.mxu1 %v469_v45  ;;  %v699_v44 = vld [vmem:[#allocation8 + $0x50] sm:$0xff]  ;;  %v714_v45 = vld [vmem:[#allocation8 + $0xc8] sm:$0xff] }
  0x99   : > { %541 = vmatprep.subr.mxu0 %v464_v46  ;;  %618 = vmatprep.subr.mxu1 %v466_v47  ;;  %v698_v46 = vld [vmem:[#allocation8 + $0x48] sm:$0xff]  ;;  %v713_v47 = vld [vmem:[#allocation8 + $0xc0] sm:$0xff] }
  0x9a   : > { %542 = vmatpush2.msra.mxu0 %v463_v48  ;;  %619 = vmatpush2.msra.mxu1 %v465_v49  ;;  %v697_v48 = vld [vmem:[#allocation8 + $0x40] sm:$0xff]  ;;  %v712_v49 = vld [vmem:[#allocation8 + $0xb8] sm:$0xff] }
  0x9b   : > { %543 = vmatprep.subr.mxu0 %v460_v50  ;;  %620 = vmatprep.subr.mxu1 %v462_v51  ;;  %v696_v50 = vld [vmem:[#allocation8 + $0x38] sm:$0xff]  ;;  %v711_v51 = vld [vmem:[#allocation8 + $0xb0] sm:$0xff] }
  0x9c   : > { %544 = vmatpush2.msra.mxu0 %v459_v52  ;;  %621 = vmatpush2.msra.mxu1 %v461_v53  ;;  %v695_v52 = vld [vmem:[#allocation8 + $0x30] sm:$0xff]  ;;  %v710_v53 = vld [vmem:[#allocation8 + $0xa8] sm:$0xff] }
  0x9d   : > { %545 = vmatprep.subr.mxu0 %v456_v54  ;;  %622 = vmatprep.subr.mxu1 %v458_v55  ;;  %v694_v54 = vld [vmem:[#allocation8 + $0x28] sm:$0xff]  ;;  %v709_v55 = vld [vmem:[#allocation8 + $0xa0] sm:$0xff] }
  0x9e   : > { %546 = vmatpush2.msra.mxu0 %v455_v56  ;;  %623 = vmatpush2.msra.mxu1 %v457_v57  ;;  %v693_v56 = vld [vmem:[#allocation8 + $0x20] sm:$0xff]  ;;  %v708_v57 = vld [vmem:[#allocation8 + $0x98] sm:$0xff] }
  0x9f   : > { %547 = vmatprep.subr.mxu0 %v452_v58  ;;  %624 = vmatprep.subr.mxu1 %v454_v59  ;;  %v692_v58 = vld [vmem:[#allocation8 + $0x18] sm:$0xff]  ;;  %v707_v59 = vld [vmem:[#allocation8 + $0x90] sm:$0xff] }
  0xa0   : > { %548 = vmatpush2.msra.mxu0 %v451_v60  ;;  %625 = vmatpush2.msra.mxu1 %v453_v61  ;;  %v691_v60 = vld [vmem:[#allocation8 + $0x10] sm:$0xff]  ;;  %v706_v61 = vld [vmem:[#allocation8 + $0x88] sm:$0xff] }
  0xa1   : > { %549 = vmatprep.subr.mxu0 %v448_v62  ;;  %626 = vmatprep.subr.mxu1 %v450_v63  ;;  %v690_v62 = vld [vmem:[#allocation8 + $0x8] sm:$0xff]  ;;  %v705_v63 = vld [vmem:[#allocation8 + $0x80] sm:$0xff] }
  0xa2   : > { %550 = vmatpush2.msra.mxu0 %v447_v3  ;;  %627 = vmatpush2.msra.mxu1 %v449_v4  ;;  %v689_v3 = vld [vmem:[#allocation8] sm:$0xff] }
  0xa3   : > { %551 = vmatprep.subr.mxu0 %v444_v5  ;;  %628 = vmatprep.subr.mxu1 %v446_v6 }
  0xa4   : > { %552 = vmatpush2.msra.mxu0 %v443_v7  ;;  %629 = vmatpush2.msra.mxu1 %v445_v8 }
  0xa5   : > { %553 = vmatprep.subr.mxu0 %v440_v9  ;;  %630 = vmatprep.subr.mxu1 %v442_v10 }
  0xa6   : > { %554 = vmatpush2.msra.mxu0 %v439_v11  ;;  %631 = vmatpush2.msra.mxu1 %v441_v12 }
  0xa7   : > { %555 = vmatprep.subr.mxu0 %v436_v13  ;;  %632 = vmatprep.subr.mxu1 %v438_v14 }
  0xa8   : > { %556 = vmatpush2.msra.mxu0 %v435_v15  ;;  %633 = vmatpush2.msra.mxu1 %v437_v16 }
  0xa9   : > { %557 = vmatprep.subr.mxu0 %v432_v17  ;;  %634 = vmatprep.subr.mxu1 %v434_v18 }
  0xaa   : > { %558 = vmatpush2.msra.mxu0 %v431_v19  ;;  %635 = vmatpush2.msra.mxu1 %v433_v20 }
  0xab   : > { %975 = vmatprep.subr.mxu0 %v720_v21  ;;  %1013 = vmatprep.subr.mxu1 %v720_v21 }
  0xe0   : > { %v1143_v24 = vpop.permute.xlu0 %1142 }
  0xe1   : > { %v1145_v27 = vunpack.i.h.bf16 %v1143_v24  ;;  %v1144_v28 = vunpack.i.l.bf16 %v1143_v24 }
  0xe3   : > { %v365_v29 = vsel %vm362_vm3, %v345_v25, %v1144_v28  ;;  %v363_v30 = vsel %vm362_vm3, %v1568_v0, %v1145_v27  ;;  %v718_v0 = vld [vmem:[#allocation8 + $0xe8] sm:$0xff] }
  0xe4   : > { %v1148_v32 = vpop.permute.xlu0 %1147  ;;  %559 = vmatprep.mubr.f32.mxu0 %v365_v29  ;;  %636 = vmatprep.mubr.f32.mxu1 %v365_v29 }
  0xe5   : > { %v1150_v35 = vunpack.i.h.bf16 %v1148_v32  ;;  %v1149_v36 = vunpack.i.l.bf16 %v1148_v32  ;;  %560 = vmatmul.mubr.f32.vlgmr.msra.gmra.mxu0 %v363_v30  ;;  %637 = vmatmul.mubr.f32.vlgmr.msra.gmra.mxu1 %v363_v30 }
  0xe6   : > { %976 = vmatpush3.msra.mxu0 %v704_v31  ;;  %1029 = vmatpush3.msra.mxu1 %v704_v31 }
  0xe7   : > { %v366_v2 = vsel %vm362_vm3, %v347_v33, %v1149_v36  ;;  %v364_v37 = vsel %vm362_vm3, %v1570_v1, %v1150_v35  ;;  %977 = vmatprep.subr.mxu0 %v719_v34  ;;  %1014 = vmatprep.subr.mxu1 %v719_v34  ;;  %v716_v1 = vld [vmem:[#allocation8 + $0xd8] sm:$0xff] }
  0xe8   : > { %565 = vmatprep.mubr.f32.mxu0 %v366_v2  ;;  %642 = vmatprep.mubr.f32.mxu1 %v366_v2 }
  0xe9   : > { %566 = vmatmul.mubr.f32.gmra.mxu0 %v364_v37  ;;  %643 = vmatmul.mubr.f32.gmra.mxu1 %v364_v37 }
  0xea   : > { %978 = vmatpush3.msra.mxu0 %v703_v38  ;;  %1030 = vmatpush3.msra.mxu1 %v703_v38 }
  0xeb   : > { %979 = vmatprep.subr.mxu0 %v718_v0  ;;  %1015 = vmatprep.subr.mxu1 %v718_v0 }
  0xec   : > { %980 = vmatpush3.msra.mxu0 %v702_v39  ;;  %1031 = vmatpush3.msra.mxu1 %v702_v39 }
  0xed   : > { %981 = vmatprep.subr.mxu0 %v717_v40  ;;  %1016 = vmatprep.subr.mxu1 %v717_v40 }
  0xee   : > { %982 = vmatpush3.msra.mxu0 %v701_v41  ;;  %1032 = vmatpush3.msra.mxu1 %v701_v41 }
  0xef   : > { %983 = vmatprep.subr.mxu0 %v716_v1  ;;  %1017 = vmatprep.subr.mxu1 %v716_v1 }
  0xf0   : > { %984 = vmatpush3.msra.mxu0 %v700_v42  ;;  %1033 = vmatpush3.msra.mxu1 %v700_v42 }
  0xf1   : > { %985 = vmatprep.subr.mxu0 %v715_v43  ;;  %1018 = vmatprep.subr.mxu1 %v715_v43 }
  0xf2   : > { %986 = vmatpush3.msra.mxu0 %v699_v44  ;;  %1034 = vmatpush3.msra.mxu1 %v699_v44 }
  0xf3   : > { %987 = vmatprep.subr.mxu0 %v714_v45  ;;  %1019 = vmatprep.subr.mxu1 %v714_v45 }
  0xf4   : > { %988 = vmatpush3.msra.mxu0 %v698_v46  ;;  %1035 = vmatpush3.msra.mxu1 %v698_v46 }
  0xf5   : > { %989 = vmatprep.subr.mxu0 %v713_v47  ;;  %1020 = vmatprep.subr.mxu1 %v713_v47 }
  0xf6   : > { %990 = vmatpush3.msra.mxu0 %v697_v48  ;;  %1036 = vmatpush3.msra.mxu1 %v697_v48 }
  0xf7   : > { %991 = vmatprep.subr.mxu0 %v712_v49  ;;  %1021 = vmatprep.subr.mxu1 %v712_v49 }
  0xf8   : > { %992 = vmatpush3.msra.mxu0 %v696_v50  ;;  %1037 = vmatpush3.msra.mxu1 %v696_v50 }
  0xf9   : > { %993 = vmatprep.subr.mxu0 %v711_v51  ;;  %1022 = vmatprep.subr.mxu1 %v711_v51 }
  0xfa   : > { %994 = vmatpush3.msra.mxu0 %v695_v52  ;;  %1038 = vmatpush3.msra.mxu1 %v695_v52 }
  0xfb   : > { %995 = vmatprep.subr.mxu0 %v710_v53  ;;  %1023 = vmatprep.subr.mxu1 %v710_v53 }
  0xfc   : > { %996 = vmatpush3.msra.mxu0 %v694_v54  ;;  %1039 = vmatpush3.msra.mxu1 %v694_v54 }
  0xfd   : > { %997 = vmatprep.subr.mxu0 %v709_v55  ;;  %1024 = vmatprep.subr.mxu1 %v709_v55 }
  0xfe   : > { %998 = vmatpush3.msra.mxu0 %v693_v56  ;;  %1040 = vmatpush3.msra.mxu1 %v693_v56 }
  0xff   : > { %999 = vmatprep.subr.mxu0 %v708_v57  ;;  %1025 = vmatprep.subr.mxu1 %v708_v57 }
 0x100   : > { %1000 = vmatpush3.msra.mxu0 %v692_v58  ;;  %1041 = vmatpush3.msra.mxu1 %v692_v58 }
 0x101   : > { %1001 = vmatprep.subr.mxu0 %v707_v59  ;;  %1026 = vmatprep.subr.mxu1 %v707_v59 }
 0x102   : > { %1002 = vmatpush3.msra.mxu0 %v691_v60  ;;  %1042 = vmatpush3.msra.mxu1 %v691_v60 }
 0x103   : > { %1003 = vmatprep.subr.mxu0 %v706_v61  ;;  %1027 = vmatprep.subr.mxu1 %v706_v61 }
 0x104   : > { %1004 = vmatpush3.msra.mxu0 %v690_v62  ;;  %1043 = vmatpush3.msra.mxu1 %v690_v62 }
 0x105   : > { %1005 = vmatprep.subr.mxu0 %v705_v63  ;;  %1028 = vmatprep.subr.mxu1 %v705_v63 }
 0x106   : > { %1006 = vmatpush3.msra.mxu0 %v689_v3  ;;  %1044 = vmatpush3.msra.mxu1 %v689_v3 }
 0x1a5   : > { %v561_v4 = vpop.f32.mrf.mxu0  ;;  %v638_v5 = vpop.f32.mrf.mxu1 }
 0x1a6   : > { %v649_v6 = vmul.f32 %v561_v4, %v561_v4  ;;  %v653_v7 = vmul.f32 %v638_v5, %v638_v5 }
 0x1a7   : > { %v563_v8 = vpop.f32.mrf.mxu0  ;;  %v640_v9 = vpop.f32.mrf.mxu1 }
 0x1a8   : > { %v657_v10 = vadd.f32 %v653_v7, %v649_v6  ;;  %v650_v11 = vmul.f32 %v563_v8, %v563_v8  ;;  %v654_v12 = vmul.f32 %v640_v9, %v640_v9 }
 0x1a9   : > { %v567_v13 = vpop.f32.mrf.mxu0  ;;  %v644_v14 = vpop.f32.mrf.mxu1 }
 0x1aa   : > { %1151 = vrsqrt.f32 %v657_v10  ;;  %v658_v15 = vadd.f32 %v654_v12, %v650_v11  ;;  %v651_v16 = vmul.f32 %v567_v13, %v567_v13  ;;  %v655_v17 = vmul.f32 %v644_v14, %v644_v14 }
 0x1ab   : > { %v569_v18 = vpop.f32.mrf.mxu0  ;;  %v646_v19 = vpop.f32.mrf.mxu1  ;;  %vm663_vm4 = vcmp.eq.f32.partialorder %v657_v10, inf  ;;  %v666_v32 = vand.u32 2147483648, %v657_v10  ;;  %vm665_vm7 = vcmp.eq.f32.partialorder %v657_v10, 0.0 }
 0x1ac   : > { %1153 = vrsqrt.f32 %v658_v15  ;;  %v659_v20 = vadd.f32 %v655_v17, %v651_v16  ;;  %v652_v21 = vmul.f32 %v569_v18, %v569_v18  ;;  %v656_v22 = vmul.f32 %v646_v19, %v646_v19 }
 0x1ad   : > { %vm670_vm5 = vcmp.eq.f32.partialorder %v658_v15, inf  ;;  %v673_v29 = vand.u32 2147483648, %v658_v15  ;;  %vm672_vm6 = vcmp.eq.f32.partialorder %v658_v15, 0.0 }
 0x1ae   : > { %1155 = vrsqrt.f32 %v659_v20  ;;  %v660_v23 = vadd.f32 %v656_v22, %v652_v21  ;;  %vm677_vm8 = vcmp.eq.f32.partialorder %v659_v20, inf  ;;  %v680_v39 = vand.u32 2147483648, %v659_v20 }
 0x1af   : > { %vm679_vm11 = vcmp.eq.f32.partialorder %v659_v20, 0.0 }
 0x1b0   : > { %1157 = vrsqrt.f32 %v660_v23  ;;  %vm684_vm9 = vcmp.eq.f32.partialorder %v660_v23, inf  ;;  %v687_v37 = vand.u32 2147483648, %v660_v23  ;;  %vm686_vm10 = vcmp.eq.f32.partialorder %v660_v23, 0.0 }
 0x1b7   : > { %v1152_v24 = vpop.eup %1151 }
 0x1b8   : > { %v662_v25 = vmul.f32 %v1152_v24, %v657_v10 }
 0x1b9   : > { %v1154_v26 = vpop.eup %1153 }
 0x1ba   : > { %v669_v27 = vmul.f32 %v1154_v26, %v658_v15  ;;  %v664_v30 = vsel %vm663_vm4, %v657_v10, %v662_v25 }
 0x1bb   : > { %v1156_v28 = vpop.eup %1155  ;;  %v667_v36 = vsel %vm665_vm7, %v666_v32, %v664_v30 }
 0x1bc   : > { %v671_v31 = vsel %vm670_vm5, %v658_v15, %v669_v27  ;;  %v676_v33 = vmul.f32 %v1156_v28, %v659_v20 }
 0x1bd   : > { %v1158_v34 = vpop.eup %1157  ;;  %v674_v35 = vsel %vm672_vm6, %v673_v29, %v671_v31 }
 0x1be   : > { %785 = vmatprep.mubr.f32.mxu0 %v674_v35  ;;  %v683_v2 = vmul.f32 %v1158_v34, %v660_v23  ;;  %v678_v38 = vsel %vm677_vm8, %v659_v20, %v676_v33 }
 0x1bf   : > { %786 = vmatmul.mubr.f32.vlgmr.msra.gmra.mxu0 %v667_v36  ;;  %v681_v41 = vsel %vm679_vm11, %v680_v39, %v678_v38 }
 0x1c0   : > { %v685_v0 = vsel %vm684_vm9, %v660_v23, %v683_v2 }
 0x1c1   : > { %v688_v40 = vsel %vm686_vm10, %v687_v37, %v685_v0 }
 0x1c2   : > { %790 = vmatprep.mubr.f32.mxu1 %v688_v40 }
 0x1c3   : > { %791 = vmatmul.mubr.f32.vlgmr.msra.gmra.mxu1 %v681_v41 }
 0x27f   : > { %v1007_v1 = vpop.f32.mrf.mxu0 }
 0x281   : > { %v1008_v42 = vpop.f32.mrf.mxu0 }
 0x282   : > { %v1009_v43 = vadd.f32 %v1008_v42, %v1007_v1 }
 0x283   : > { %v1010_v44 = vpop.f32.mrf.mxu1 }
 0x284   : > { %v796_v45 = vmax.f32 %v1009_v43, 1e-05 }
 0x285   : > { %v1011_v46 = vpop.f32.mrf.mxu1 }
 0x286   : > { %1159 = vlog2.f32 %v796_v45  ;;  %v1012_v47 = vadd.f32 %v1011_v46, %v1010_v44 }
 0x288   : > { %v797_v48 = vmax.f32 %v1012_v47, 1e-05 }
 0x28a   : > { %1161 = vlog2.f32 %v797_v48 }
 0x293   : > { %v1160_v49 = vpop.eup %1159 }
 0x294   : > { %v799_v50 = vmul.f32 0.6931472, %v1160_v49 }
 0x296   : > { %802 = vst [vmem:[%s315_s23] sm:$0xff] %v799_v50 }
 0x297   : > { %v1162_v51 = vpop.eup %1161 }
 0x298   : > { %v801_v52 = vmul.f32 0.6931472, %v1162_v51 }
 0x29a   : > { %803 = vst [vmem:[%s315_s23 + $0x8] sm:$0xff] %v801_v52 }
 0x29b   : > { %1285 = shalt.err (!%p1282_p1)
}
 0x29c   : > { %s1286_s7 = scalar_lea.hbm %s1601_s13, 256  ;;  %s1290_s12 = scalar_lea.hbm %s1653_s4, 512 }
 0x29d   : > { %p1287_p2 = scmp.ne.s32.totalorder %s1601_s13, %s1286_s7  ;;  %p1291_p13 = scmp.lt.s32.totalorder %s1601_s13, %s1653_s4 }
 0x29e   : > { %p1292_p0 = scmp.lt.s32.totalorder %s1290_s12, %s1286_s7 }
 0x29f   : > { %p1288_p6 = pnand %p1287_p2, %p1497_p9 }
 0x2a0   : > { %p1293_p12 = por %p1292_p0, %p1291_p13 }
 0x2a1   : > { %p1289_p8 = pneg %p1288_p6 }
 0x2a3   : > { %p1294_p4 = pnand %p1293_p12, %p1289_p8 }
 0x2a5   : > { %1297 = shalt.err (!%p1294_p4)
}
 0x2a6   : > { %s1376_s17 = smov 128   ;;  %s1377_s19 = smov 8  }
 0x2a7   : > { %1058 = dma.vmem_to_hbm [thread:$0]  (%p1497_p9), %s1596_s29, 256, %s1601_s13, %s805_s14, %s1376_s17, %s1376_s17, %s1377_s19  }
 0x2a8 PF: > { %s835_s25 = sand.u32 1, %s1344_s15   ;;  %p1681_p3 = scmp.ne.s32.totalorder %s1665_s24, 0 }
 0x2a9   : > { %p1682_p7 = scmp.ge.s32.totalorder %s1364_s20, 2  ;;  %s836_s11 = scalar_lea.sflag [#allocation4], %s835_s25 }
 0x2ab   : > { %p1075_p11 = pnand %p1682_p7, %p1681_p3 }
 0x2ad   : > { %p1076_p5 = pneg %p1075_p11 }
 0x2af   : > { %1339 = dma.done.wait (%p1076_p5), %s836_s11, 256  }
 0x2b0   : > { %1341 = vsyncadd (%p1076_p5), %s836_s11, 4294967040  ;;  %s24_s20 = sadd.s32 1, %s1364_s20   ;;  %s1683_s22 = sld [smem:[#allocation16_spill]] }
 0x2b1   : > { %p21_p10 = scmp.ge.s32.totalorder %s24_s20, 4   ;;  %s1684_s17 = sld [smem:[#allocation19_spill]] }
 0x2b2   : > { %s1685_s18 = sld [smem:[#allocation17_spill]]  ;;  %s1687_s15 = smov %s1348_s16 }
 0x2b3   : > { %s1686_s19 = sld [smem:[#allocation18_spill]]  ;;  %23 = sbr.rel (!%p21_p10) target bundleno = 13 (0xd), region = 102 }
 0x2b6   : > { %s1688_s16 = smov %s1683_s22 }
 0x2b8   :  { %841 = vsyncpa [#allocation3], 1 }
 0x2b9   :  { %843 = vsyncpa [#allocation3 + $0x1], 1 }
 0x2ba   :  { %844 = vsyncpa [#allocation6], 1 }
 0x2bb   :  { %846 = vsyncpa [#allocation6 + $0x1], 1 }
 0x2bc   :  { %847 = vsyncpa [#allocation9], 1 }
 0x2bd   :  { %848 = vsyncpa [#allocation4], 1 }
 0x2be   :  { %850 = vsyncpa [#allocation4 + $0x1], 1 }

</bundles_post_ra>
